<compile_context>
chip_gen: v6e
topology: v6e:2x2x1
jax: 0.10.0
libtpu: 0.0.40
codegen_flags: <defaults>
</compile_context>

<pallas_src>
import functools

import jax
import jax.numpy as jnp
from jax.experimental import pallas as pl
from jax.experimental.pallas import tpu as pltpu

_BN_EPS = 1e-5
_LANE = 128
_SUBLANE = 8


def _round_up(n, m):
    return (n + m - 1) // m * m


def _pad2(a, rows, cols):
    r, c = a.shape
    return jnp.pad(a, ((0, rows - r), (0, cols - c)))


def _detect_vmem_limit():
    """Generation-aware scoped-VMEM budget (bytes); conservative fallback."""
    default = 32 * 1024 * 1024
    try:
        info = pltpu.get_tpu_info()
        cap = getattr(info, "vmem_capacity_bytes", None)
        if not cap:
            return default
        # ~3/4 of physical: 128 MiB -> 96 MiB (v5e/v6e), 64 MiB -> 48 MiB (v7x).
        return max(default, min(int(cap) * 3 // 4, 96 * 1024 * 1024))
    except Exception:
        return default


_VMEM_LIMIT = _detect_vmem_limit()


def _cp(sem=None):
    return pltpu.CompilerParams(dimension_semantics=sem,
                                vmem_limit_bytes=_VMEM_LIMIT)


# ---------------------------------------------------------------------------
# Fused kernel: whole (padded) batch resident in VMEM, BN stats on-chip.
# ---------------------------------------------------------------------------
def _fused_kernel(x_ref,
                  w1_ref, b1_ref, w2_ref, b2_ref, w3_ref, b3_ref,
                  g1_ref, bt1_ref, g2_ref, bt2_ref,
                  out_ref, *, n_valid):
    x = x_ref[...]
    inv_n = 1.0 / n_valid

    def matmul(a, w_ref, b_ref):
        # Feed the MXU in the (bf16) weight dtype, accumulate in f32.
        return jnp.dot(a.astype(w_ref.dtype), w_ref[...],
                       preferred_element_type=jnp.float32) + b_ref[...]

    def bn(h, g_ref, bt_ref):
        if n_valid == h.shape[0]:
            hm = h
        else:  # padded batch rows: exclude from the statistics
            rows = jax.lax.broadcasted_iota(jnp.int32, h.shape, 0)
            hm = jnp.where(rows < n_valid, h, 0.0)
        mean = jnp.sum(hm, axis=0, keepdims=True) * inv_n
        ex2 = jnp.sum(hm * hm, axis=0, keepdims=True) * inv_n
        var = jnp.maximum(ex2 - mean * mean, 0.0)
        scale = g_ref[...] * jax.lax.rsqrt(var + _BN_EPS)
        shift = bt_ref[...] - mean * scale
        return h * scale + shift          # 2 VPU ops / element

    h1 = jnp.maximum(matmul(x, w1_ref, b1_ref), 0.0)
    h1n = bn(h1, g1_ref, bt1_ref)
    h2 = jnp.maximum(matmul(h1n, w2_ref, b2_ref), 0.0)
    h2n = bn(h2, g2_ref, bt2_ref)
    out_ref[...] = matmul(h2n, w3_ref, b3_ref).astype(out_ref.dtype)


# ---------------------------------------------------------------------------
# Batch-tiled path kernels (two-pass BN, per-tile partial statistics so every
# pass is 'parallel'; wrapper reduces the nt partial rows).
# ---------------------------------------------------------------------------
def _lin_stats_kernel(x_ref, w_ref, b_ref, h_ref, sum_ref, sq_ref,
                      *, batch, tile, padded_batch):
    i = pl.program_id(0)
    h = jnp.dot(x_ref[...].astype(w_ref.dtype), w_ref[...],
                preferred_element_type=jnp.float32) + b_ref[...]
    h = jnp.maximum(h, 0.0)
    h_ref[...] = h.astype(h_ref.dtype)          # bf16 activation store

    # Per-tile partial sums (own output row -> no cross-step accumulation).
    sum_ref[...] = jnp.sum(h, axis=0, keepdims=True)[None]
    sq_ref[...] = jnp.sum(h * h, axis=0, keepdims=True)[None]

    if batch != padded_batch:
        # Only the last tile contains padded rows; mask them out only there.
        @pl.when(i == pl.num_programs(0) - 1)
        def _():
            rows = i * tile + jax.lax.broadcasted_iota(jnp.int32, h.shape, 0)
            hm = jnp.where(rows < batch, h, 0.0)
            sum_ref[...] = jnp.sum(hm, axis=0, keepdims=True)[None]
            sq_ref[...] = jnp.sum(hm * hm, axis=0, keepdims=True)[None]


def _affine_lin_stats_kernel(h_ref, s_ref, t_ref, w_ref, b_ref,
                             o_ref, sum_ref, sq_ref,
                             *, batch, tile, padded_batch):
    i = pl.program_id(0)
    hn = h_ref[...].astype(jnp.float32) * s_ref[...] + t_ref[...]  # folded BN
    o = jnp.dot(hn.astype(w_ref.dtype), w_ref[...],
                preferred_element_type=jnp.float32) + b_ref[...]
    o = jnp.maximum(o, 0.0)
    o_ref[...] = o.astype(o_ref.dtype)

    sum_ref[...] = jnp.sum(o, axis=0, keepdims=True)[None]
    sq_ref[...] = jnp.sum(o * o, axis=0, keepdims=True)[None]

    if batch != padded_batch:
        @pl.when(i == pl.num_programs(0) - 1)
        def _():
            rows = i * tile + jax.lax.broadcasted_iota(jnp.int32, o.shape, 0)
            om = jnp.where(rows < batch, o, 0.0)
            sum_ref[...] = jnp.sum(om, axis=0, keepdims=True)[None]
            sq_ref[...] = jnp.sum(om * om, axis=0, keepdims=True)[None]


def _affine_lin_kernel(h_ref, s_ref, t_ref, w_ref, b_ref, out_ref):
    hn = h_ref[...].astype(jnp.float32) * s_ref[...] + t_ref[...]
    out_ref[...] = (jnp.dot(hn.astype(w_ref.dtype), w_ref[...],
                            preferred_element_type=jnp.float32)
                    + b_ref[...]).astype(out_ref.dtype)


def _fold_bn(sums, sumsq, gamma, beta, n):
    """Per-feature scale/shift from accumulated sum / sum-of-squares (tiny)."""
    mean = sums / n
    var = jnp.maximum(sumsq / n - mean * mean, 0.0)
    scale = gamma * jax.lax.rsqrt(var + _BN_EPS)
    shift = beta - mean * scale
    return scale, shift


def _fused_footprint_bytes(Bp, Dp, H1p, H2p, Dop, wsize):
    w_bytes = (Dp * H1p + H1p * H2p + H2p * Dop) * wsize
    vec_bytes = (3 * H1p + 3 * H2p + 2 * Dop) * 4
    act_bytes = Bp * (Dp + H1p + H2p + Dop) * 4     # f32 activation slabs
    return w_bytes + vec_bytes + 2 * act_bytes      # 2x headroom for temporaries


# ---------------------------------------------------------------------------
# Wrapper
# ---------------------------------------------------------------------------
def mynet_forward(x, params, *, batch_tile=1024, use_bf16=True):
    """x: [B, D_in] float32. params: dict of weights (see init_params)."""
    B, D_in = x.shape
    H1 = params["w1"].shape[1]
    H2 = params["w2"].shape[1]
    D_out = params["w3"].shape[1]

    Dp, H1p, H2p, Dop = (_round_up(d, _LANE) for d in (D_in, H1, H2, D_out))

    wdt = jnp.bfloat16 if use_bf16 else jnp.float32
    act_dt = jnp.bfloat16 if use_bf16 else jnp.float32
    wsize = 2 if use_bf16 else 4

    w1 = _pad2(params["w1"], Dp, H1p).astype(wdt)
    w2 = _pad2(params["w2"], H1p, H2p).astype(wdt)
    w3 = _pad2(params["w3"], H2p, Dop).astype(wdt)
    b1 = _pad2(params["b1"], 1, H1p)
    b2 = _pad2(params["b2"], 1, H2p)
    b3 = _pad2(params["b3"], 1, Dop)
    g1 = _pad2(params["g1"], 1, H1p)   # padded gamma = 0 -> padded cols stay 0
    g2 = _pad2(params["g2"], 1, H2p)
    bt1 = _pad2(params["beta1"], 1, H1p)
    bt2 = _pad2(params["beta2"], 1, H2p)

    # ---------------- small batch: single fused call -----------------------
    row_align = 16 if use_bf16 else _SUBLANE       # bf16 packs 2 rows/sublane
    Bp_fused = _round_up(B, row_align)
    fused_ok = (B <= batch_tile and
                _fused_footprint_bytes(Bp_fused, Dp, H1p, H2p, Dop, wsize)
                <= _VMEM_LIMIT // 2)

    if fused_ok:
        xp = _pad2(x, Bp_fused, Dp)
        args = (xp, w1, b1, w2, b2, w3, b3, g1, bt1, g2, bt2)
        full = lambda a: pl.BlockSpec(a.shape, lambda: (0,) * a.ndim)
        y = pl.pallas_call(
            functools.partial(_fused_kernel, n_valid=B),
            out_shape=jax.ShapeDtypeStruct((Bp_fused, Dop), jnp.float32),
            grid=(),
            in_specs=[full(a) for a in args],
            out_specs=pl.BlockSpec((Bp_fused, Dop), lambda: (0, 0)),
            compiler_params=_cp(),
        )(*args)
        return y[:B, :D_out]

    # ---------------- large batch: batch-tiled, two-pass BN ----------------
    TB = min(batch_tile, _round_up(B, 16))
    Bp = _round_up(B, TB)
    nt = Bp // TB
    xp = _pad2(x, Bp, Dp)

    row_spec = lambda d: pl.BlockSpec((TB, d), lambda i: (i, 0))
    const_spec = lambda shape: pl.BlockSpec(shape, lambda i: (0,) * len(shape))
    part_spec = lambda d: pl.BlockSpec((1, 1, d), lambda i: (i, 0, 0))
    asz = 2 if use_bf16 else 4

    # Pass 1: h1 = relu(x @ w1 + b1); per-tile BN1 partial sums.
    ce1 = pl.CostEstimate(
        flops=2 * Bp * Dp * H1p, transcendentals=0,
        bytes_accessed=Bp * Dp * 4 + Dp * H1p * wsize + Bp * H1p * asz
        + 2 * nt * H1p * 4)
    h1, s1p, q1p = pl.pallas_call(
        functools.partial(_lin_stats_kernel, batch=B, tile=TB, padded_batch=Bp),
        out_shape=(jax.ShapeDtypeStruct((Bp, H1p), act_dt),
                   jax.ShapeDtypeStruct((nt, 1, H1p), jnp.float32),
                   jax.ShapeDtypeStruct((nt, 1, H1p), jnp.float32)),
        grid=(nt,),
        in_specs=[row_spec(Dp), const_spec((Dp, H1p)), const_spec((1, H1p))],
        out_specs=(row_spec(H1p), part_spec(H1p), part_spec(H1p)),
        compiler_params=_cp(("parallel",)),
        cost_estimate=ce1,
    )(xp, w1, b1)
    sc1, sh1 = _fold_bn(jnp.sum(s1p, axis=0), jnp.sum(q1p, axis=0), g1, bt1, B)

    # Pass 2: h2 = relu(bn1(h1) @ w2 + b2); per-tile BN2 partial sums.
    ce2 = pl.CostEstimate(
        flops=2 * Bp * H1p * H2p, transcendentals=0,
        bytes_accessed=Bp * H1p * asz + H1p * H2p * wsize + Bp * H2p * asz
        + 2 * nt * H2p * 4)
    h2, s2p, q2p = pl.pallas_call(
        functools.partial(_affine_lin_stats_kernel, batch=B, tile=TB,
                          padded_batch=Bp),
        out_shape=(jax.ShapeDtypeStruct((Bp, H2p), act_dt),
                   jax.ShapeDtypeStruct((nt, 1, H2p), jnp.float32),
                   jax.ShapeDtypeStruct((nt, 1, H2p), jnp.float32)),
        grid=(nt,),
        in_specs=[row_spec(H1p), const_spec((1, H1p)), const_spec((1, H1p)),
                  const_spec((H1p, H2p)), const_spec((1, H2p))],
        out_specs=(row_spec(H2p), part_spec(H2p), part_spec(H2p)),
        compiler_params=_cp(("parallel",)),
        cost_estimate=ce2,
    )(h1, sc1, sh1, w2, b2)
    sc2, sh2 = _fold_bn(jnp.sum(s2p, axis=0), jnp.sum(q2p, axis=0), g2, bt2, B)

    # Pass 3: y = bn2(h2) @ w3 + b3; tiles independent.
    ce3 = pl.CostEstimate(
        flops=2 * Bp * H2p * Dop, transcendentals=0,
        bytes_accessed=Bp * H2p * asz + H2p * Dop * wsize + Bp * Dop * 4)
    y = pl.pallas_call(
        _affine_lin_kernel,
        out_shape=jax.ShapeDtypeStruct((Bp, Dop), jnp.float32),
        grid=(nt,),
        in_specs=[row_spec(H2p), const_spec((1, H2p)), const_spec((1, H2p)),
                  const_spec((H2p, Dop)), const_spec((1, Dop))],
        out_specs=row_spec(Dop),
        compiler_params=_cp(("parallel",)),
        cost_estimate=ce3,
    )(h2, sc2, sh2, w3, b3)

    return y[:B, :D_out]


# ---------------------------------------------------------------------------
# Params / reference
# ---------------------------------------------------------------------------
def init_params(key, D_in, H1, H2, D_out):
    """Deterministic init mimicking PyTorch defaults (uniform +-1/sqrt(fan_in))."""
    ks = jax.random.split(key, 6)

    def lin(kw, kb, fan_in, fan_out):
        bound = 1.0 / jnp.sqrt(fan_in)
        w = jax.random.uniform(kw, (fan_in, fan_out), jnp.float32, -bound, bound)
        b = jax.random.uniform(kb, (1, fan_out), jnp.float32, -bound, bound)
        return w, b

    w1, b1 = lin(ks[0], ks[1], D_in, H1)
    w2, b2 = lin(ks[2], ks[3], H1, H2)
    w3, b3 = lin(ks[4], ks[5], H2, D_out)

    return dict(
        w1=w1, b1=b1, w2=w2, b2=b2, w3=w3, b3=b3,
        g1=jnp.ones((1, H1), jnp.float32), beta1=jnp.zeros((1, H1), jnp.float32),
        g2=jnp.ones((1, H2), jnp.float32), beta2=jnp.zeros((1, H2), jnp.float32),
    )


def _reference(x, p, mxu_dtype=None):
    """Pure-JAX reference of MyNet.forward (training-mode BN).

    mxu_dtype=None         -> exact f32 PyTorch-equivalent math.
    mxu_dtype=jnp.bfloat16 -> emulate the kernel's bf16 MXU operands
                              (f32 accumulation), so the comparison is tight.
    """
    def mm(a, w):
        if mxu_dtype is not None:
            a = a.astype(mxu_dtype)
            w = w.astype(mxu_dtype)
        return jnp.dot(a, w, preferred_element_type=jnp.float32)

    h1 = jnp.maximum(mm(x, p["w1"]) + p["b1"], 0.0)
    m1 = h1.mean(0, keepdims=True)
    v1 = ((h1 - m1) ** 2).mean(0, keepdims=True)
    h1n = (h1 - m1) / jnp.sqrt(v1 + _BN_EPS) * p["g1"] + p["beta1"]
    h2 = jnp.maximum(mm(h1n, p["w2"]) + p["b2"], 0.0)
    m2 = h2.mean(0, keepdims=True)
    v2 = ((h2 - m2) ** 2).mean(0, keepdims=True)
    h2n = (h2 - m2) / jnp.sqrt(v2 + _BN_EPS) * p["g2"] + p["beta2"]
    return mm(h2n, p["w3"]) + p["b3"]


if __name__ == "__main__":
    B, D_in, H1, H2, D_out = 8, 32, 64, 32, 16

    key = jax.random.PRNGKey(0)
    kx, kp, kx2 = jax.random.split(key, 3)
    x = jax.random.normal(kx, (B, D_in), jnp.float32)
    params = init_params(kp, D_in, H1, H2, D_out)

    # Small batch -> fused single-tile kernel (BN stats stay in VMEM).
    y = mynet_forward(x, params)
    jax.block_until_ready(y)
    y_ref = _reference(x, params, mxu_dtype=jnp.bfloat16)
    assert y.shape == (B, D_out)
    assert jnp.allclose(y, y_ref, atol=2e-2, rtol=2e-2), (
        "fused path mismatch", float(jnp.max(jnp.abs(y - y_ref))))

    # Larger, non-tile-aligned batch -> batch-tiled two-pass-BN 'parallel' path
    # (bf16 activation storage -> slightly looser tolerance).
    B2 = 300
    x2 = jax.random.normal(kx2, (B2, D_in), jnp.float32)
    y2 = mynet_forward(x2, params, batch_tile=128)
    jax.block_until_ready(y2)
    y2_ref = _reference(x2, params, mxu_dtype=jnp.bfloat16)
    assert y2.shape == (B2, D_out)
    assert jnp.allclose(y2, y2_ref, atol=3e-2, rtol=3e-2), (
        "tiled path mismatch", float(jnp.max(jnp.abs(y2 - y2_ref))))

    print("KERNEL_OK")
</pallas_src>

<mosaic_0001>
module attributes {stable_mosaic.version = 11 : i64} {
  func.func @_fused_kernel(%arg0: memref<16x128xf32, #tpu.memory_space<vmem>>, %arg1: memref<128x128xbf16, #tpu.memory_space<vmem>>, %arg2: memref<1x128xf32, #tpu.memory_space<vmem>>, %arg3: memref<128x128xbf16, #tpu.memory_space<vmem>>, %arg4: memref<1x128xf32, #tpu.memory_space<vmem>>, %arg5: memref<128x128xbf16, #tpu.memory_space<vmem>>, %arg6: memref<1x128xf32, #tpu.memory_space<vmem>>, %arg7: memref<1x128xf32, #tpu.memory_space<vmem>>, %arg8: memref<1x128xf32, #tpu.memory_space<vmem>>, %arg9: memref<1x128xf32, #tpu.memory_space<vmem>>, %arg10: memref<1x128xf32, #tpu.memory_space<vmem>>, %arg11: memref<16x128xf32, #tpu.memory_space<vmem>>) attributes {dimension_semantics = [], scalar_prefetch = 0 : i64, scratch_operands = 0 : i64, tpu.core_type = #tpu.core_type<tc>} {
    %c0 = arith.constant 0 : index
    %c0_0 = arith.constant 0 : index
    %0 = vector.load %arg0[%c0, %c0_0] : memref<16x128xf32, #tpu.memory_space<vmem>>, vector<16x128xf32>
    %1 = arith.truncf %0 : vector<16x128xf32> to vector<16x128xbf16>
    %c0_1 = arith.constant 0 : index
    %c0_2 = arith.constant 0 : index
    %2 = vector.load %arg1[%c0_1, %c0_2] : memref<128x128xbf16, #tpu.memory_space<vmem>>, vector<128x128xbf16>
    %cst = arith.constant dense<0.000000e+00> : vector<16x128xf32>
    %3 = tpu.matmul %1, %2, %cst {dimension_numbers = #tpu.dot_dimension_numbers<[1], [0], [0], [1], [0, 0, 1, 1], [], []>} : vector<16x128xbf16>, vector<128x128xbf16>, vector<16x128xf32> -> vector<16x128xf32>
    %c0_3 = arith.constant 0 : index
    %c0_4 = arith.constant 0 : index
    %4 = vector.load %arg2[%c0_3, %c0_4] : memref<1x128xf32, #tpu.memory_space<vmem>>, vector<1x128xf32>
    %5 = vector.broadcast %4 : vector<1x128xf32> to vector<16x128xf32>
    %6 = arith.addf %3, %5 : vector<16x128xf32>
    %cst_5 = arith.constant 0.000000e+00 : f32
    %7 = vector.broadcast %cst_5 : f32 to vector<16x128xf32>
    %8 = arith.maximumf %6, %7 : vector<16x128xf32>
    %9 = tpu.iota {dimensions = array<i32: 0>} : vector<16x128xi32>
    %c8_i32 = arith.constant 8 : i32
    %10 = vector.broadcast %c8_i32 : i32 to vector<16x128xi32>
    %11 = arith.cmpi slt, %9, %10 : vector<16x128xi32>
    %cst_6 = arith.constant 0.000000e+00 : f32
    %12 = vector.broadcast %cst_6 : f32 to vector<16x128xf32>
    %13 = arith.select %11, %8, %12 : vector<16x128xi1>, vector<16x128xf32>
    %cst_7 = arith.constant dense<0.000000e+00> : vector<128xf32>
    %14 = vector.multi_reduction <add>, %13, %cst_7 [0] : vector<16x128xf32> to vector<128xf32>
    %15 = vector.shape_cast %14 : vector<128xf32> to vector<1x128xf32>
    %cst_8 = arith.constant 1.250000e-01 : f32
    %16 = vector.broadcast %cst_8 : f32 to vector<1x128xf32>
    %17 = arith.mulf %15, %16 : vector<1x128xf32>
    %18 = arith.mulf %13, %13 : vector<16x128xf32>
    %cst_9 = arith.constant dense<0.000000e+00> : vector<128xf32>
    %19 = vector.multi_reduction <add>, %18, %cst_9 [0] : vector<16x128xf32> to vector<128xf32>
    %20 = vector.shape_cast %19 : vector<128xf32> to vector<1x128xf32>
    %cst_10 = arith.constant 1.250000e-01 : f32
    %21 = vector.broadcast %cst_10 : f32 to vector<1x128xf32>
    %22 = arith.mulf %20, %21 : vector<1x128xf32>
    %23 = arith.mulf %17, %17 : vector<1x128xf32>
    %24 = arith.subf %22, %23 : vector<1x128xf32>
    %cst_11 = arith.constant 0.000000e+00 : f32
    %25 = vector.broadcast %cst_11 : f32 to vector<1x128xf32>
    %26 = arith.maximumf %24, %25 : vector<1x128xf32>
    %c0_12 = arith.constant 0 : index
    %c0_13 = arith.constant 0 : index
    %27 = vector.load %arg7[%c0_12, %c0_13] : memref<1x128xf32, #tpu.memory_space<vmem>>, vector<1x128xf32>
    %cst_14 = arith.constant 9.99999974E-6 : f32
    %28 = vector.broadcast %cst_14 : f32 to vector<1x128xf32>
    %29 = arith.addf %26, %28 : vector<1x128xf32>
    %30 = math.rsqrt %29 : vector<1x128xf32>
    %31 = arith.mulf %27, %30 : vector<1x128xf32>
    %c0_15 = arith.constant 0 : index
    %c0_16 = arith.constant 0 : index
    %32 = vector.load %arg8[%c0_15, %c0_16] : memref<1x128xf32, #tpu.memory_space<vmem>>, vector<1x128xf32>
    %33 = arith.mulf %17, %31 : vector<1x128xf32>
    %34 = arith.subf %32, %33 : vector<1x128xf32>
    %35 = vector.broadcast %31 : vector<1x128xf32> to vector<16x128xf32>
    %36 = arith.mulf %8, %35 : vector<16x128xf32>
    %37 = vector.broadcast %34 : vector<1x128xf32> to vector<16x128xf32>
    %38 = arith.addf %36, %37 : vector<16x128xf32>
    %39 = arith.truncf %38 : vector<16x128xf32> to vector<16x128xbf16>
    %c0_17 = arith.constant 0 : index
    %c0_18 = arith.constant 0 : index
    %40 = vector.load %arg3[%c0_17, %c0_18] : memref<128x128xbf16, #tpu.memory_space<vmem>>, vector<128x128xbf16>
    %cst_19 = arith.constant dense<0.000000e+00> : vector<16x128xf32>
    %41 = tpu.matmul %39, %40, %cst_19 {dimension_numbers = #tpu.dot_dimension_numbers<[1], [0], [0], [1], [0, 0, 1, 1], [], []>} : vector<16x128xbf16>, vector<128x128xbf16>, vector<16x128xf32> -> vector<16x128xf32>
    %c0_20 = arith.constant 0 : index
    %c0_21 = arith.constant 0 : index
    %42 = vector.load %arg4[%c0_20, %c0_21] : memref<1x128xf32, #tpu.memory_space<vmem>>, vector<1x128xf32>
    %43 = vector.broadcast %42 : vector<1x128xf32> to vector<16x128xf32>
    %44 = arith.addf %41, %43 : vector<16x128xf32>
    %cst_22 = arith.constant 0.000000e+00 : f32
    %45 = vector.broadcast %cst_22 : f32 to vector<16x128xf32>
    %46 = arith.maximumf %44, %45 : vector<16x128xf32>
    %47 = tpu.iota {dimensions = array<i32: 0>} : vector<16x128xi32>
    %c8_i32_23 = arith.constant 8 : i32
    %48 = vector.broadcast %c8_i32_23 : i32 to vector<16x128xi32>
    %49 = arith.cmpi slt, %47, %48 : vector<16x128xi32>
    %cst_24 = arith.constant 0.000000e+00 : f32
    %50 = vector.broadcast %cst_24 : f32 to vector<16x128xf32>
    %51 = arith.select %49, %46, %50 : vector<16x128xi1>, vector<16x128xf32>
    %cst_25 = arith.constant dense<0.000000e+00> : vector<128xf32>
    %52 = vector.multi_reduction <add>, %51, %cst_25 [0] : vector<16x128xf32> to vector<128xf32>
    %53 = vector.shape_cast %52 : vector<128xf32> to vector<1x128xf32>
    %cst_26 = arith.constant 1.250000e-01 : f32
    %54 = vector.broadcast %cst_26 : f32 to vector<1x128xf32>
    %55 = arith.mulf %53, %54 : vector<1x128xf32>
    %56 = arith.mulf %51, %51 : vector<16x128xf32>
    %cst_27 = arith.constant dense<0.000000e+00> : vector<128xf32>
    %57 = vector.multi_reduction <add>, %56, %cst_27 [0] : vector<16x128xf32> to vector<128xf32>
    %58 = vector.shape_cast %57 : vector<128xf32> to vector<1x128xf32>
    %cst_28 = arith.constant 1.250000e-01 : f32
    %59 = vector.broadcast %cst_28 : f32 to vector<1x128xf32>
    %60 = arith.mulf %58, %59 : vector<1x128xf32>
    %61 = arith.mulf %55, %55 : vector<1x128xf32>
    %62 = arith.subf %60, %61 : vector<1x128xf32>
    %cst_29 = arith.constant 0.000000e+00 : f32
    %63 = vector.broadcast %cst_29 : f32 to vector<1x128xf32>
    %64 = arith.maximumf %62, %63 : vector<1x128xf32>
    %c0_30 = arith.constant 0 : index
    %c0_31 = arith.constant 0 : index
    %65 = vector.load %arg9[%c0_30, %c0_31] : memref<1x128xf32, #tpu.memory_space<vmem>>, vector<1x128xf32>
    %cst_32 = arith.constant 9.99999974E-6 : f32
    %66 = vector.broadcast %cst_32 : f32 to vector<1x128xf32>
    %67 = arith.addf %64, %66 : vector<1x128xf32>
    %68 = math.rsqrt %67 : vector<1x128xf32>
    %69 = arith.mulf %65, %68 : vector<1x128xf32>
    %c0_33 = arith.constant 0 : index
    %c0_34 = arith.constant 0 : index
    %70 = vector.load %arg10[%c0_33, %c0_34] : memref<1x128xf32, #tpu.memory_space<vmem>>, vector<1x128xf32>
    %71 = arith.mulf %55, %69 : vector<1x128xf32>
    %72 = arith.subf %70, %71 : vector<1x128xf32>
    %73 = vector.broadcast %69 : vector<1x128xf32> to vector<16x128xf32>
    %74 = arith.mulf %46, %73 : vector<16x128xf32>
    %75 = vector.broadcast %72 : vector<1x128xf32> to vector<16x128xf32>
    %76 = arith.addf %74, %75 : vector<16x128xf32>
    %77 = arith.truncf %76 : vector<16x128xf32> to vector<16x128xbf16>
    %c0_35 = arith.constant 0 : index
    %c0_36 = arith.constant 0 : index
    %78 = vector.load %arg5[%c0_35, %c0_36] : memref<128x128xbf16, #tpu.memory_space<vmem>>, vector<128x128xbf16>
    %cst_37 = arith.constant dense<0.000000e+00> : vector<16x128xf32>
    %79 = tpu.matmul %77, %78, %cst_37 {dimension_numbers = #tpu.dot_dimension_numbers<[1], [0], [0], [1], [0, 0, 1, 1], [], []>} : vector<16x128xbf16>, vector<128x128xbf16>, vector<16x128xf32> -> vector<16x128xf32>
    %c0_38 = arith.constant 0 : index
    %c0_39 = arith.constant 0 : index
    %80 = vector.load %arg6[%c0_38, %c0_39] : memref<1x128xf32, #tpu.memory_space<vmem>>, vector<1x128xf32>
    %81 = vector.broadcast %80 : vector<1x128xf32> to vector<16x128xf32>
    %82 = arith.addf %79, %81 : vector<16x128xf32>
    %c0_40 = arith.constant 0 : index
    %c0_41 = arith.constant 0 : index
    %83 = vector.load %arg11[%c0_40, %c0_41] : memref<16x128xf32, #tpu.memory_space<vmem>>, vector<16x128xf32>
    tpu.vector_store %arg11[%c0_40, %c0_41], %82 {strides = array<i32>} : memref<16x128xf32, #tpu.memory_space<vmem>>, vector<16x128xf32>,
    return
  }
}

</mosaic_0001>

<bundles_post_ra>
// kernel: tpu_custom_call.1
= control target key start
LH: loop header
LB: loop body
LE: loop exit
PB: predicated region body
PF: predicated region fallthrough
CT: control target
= control target key end

     0   :  { %16 = vsyncpa [#allocation3], 0  ;;  %s977_s0 = inlined_call_operand.hbm [shape: f32[16,128], index: 0, kind: input, shape index: {}]   ;;  %s978_s1 = inlined_call_operand.hbm [shape: bf16[128,128], index: 1, kind: input, shape index: {}]   ;;  %s979_s2 = inlined_call_operand.vmem [shape: f32[1,128], index: 2, kind: input, shape index: {}]   ;;  %s980_s3 = inlined_call_operand.hbm [shape: bf16[128,128], index: 3, kind: input, shape index: {}]   ;;  %s981_s4 = inlined_call_operand.vmem [shape: f32[1,128], index: 4, kind: input, shape index: {}]   ;;  %s982_s5 = inlined_call_operand.hbm [shape: bf16[128,128], index: 5, kind: input, shape index: {}]   ;;  %s983_s6 = inlined_call_operand.vmem [shape: f32[1,128], index: 6, kind: input, shape index: {}]   ;;  %s984_s7 = inlined_call_operand.vmem [shape: f32[1,128], index: 7, kind: input, shape index: {}]   ;;  %s985_s8 = inlined_call_operand.vmem [shape: f32[1,128], index: 8, kind: input, shape index: {}]   ;;  %s986_s9 = inlined_call_operand.vmem [shape: f32[1,128], index: 9, kind: input, shape index: {}]   ;;  %s987_s10 = inlined_call_operand.vmem [shape: f32[1,128], index: 10, kind: input, shape index: {}]   ;;  %s988_s11 = inlined_call_operand.hbm [shape: f32[16,128], index: 11, kind: output, shape index: {}]  }
   0x1   :  { %17 = vsyncpa [#allocation6], 0 }
   0x2   :  { %18 = vsyncpa [#allocation9], 0 }
   0x3   :  { %19 = vsyncpa [#allocation4], 0  ;;  %s819_s17 = smov [#allocation5]  }
   0x4   :  { %s37_s18 = sshll.u32 %s819_s17, 4  ;;  %s38_s18 = int_to_ptr.vmem [resolvable:$true] %s37_s18 }
   0x5   :  { %s719_s19 = scalar_lea.vmem %s38_s18, 1024  ;;  %p724_p1 = scmp.lt.s32.totalorder %s38_s18, %s38_s18 }
   0x6   :  { %p720_p0 = scmp.ne.s32.totalorder %s38_s18, %s719_s19  ;;  %p725_p2 = scmp.lt.s32.totalorder %s719_s19, %s719_s19 }
   0x8   :  { %p726_p3 = por %p725_p2, %p724_p1 }
   0xa   :  { %p727_p4 = pnand %p726_p3, %p720_p0 }
   0xc   :  { %730 = shalt.err (!%p727_p4)
}
   0xd   :  { %s820_s20 = smov 64   ;;  %s821_s21 = smov 4  }
   0xe   :  { %43 = dma.hbm_to_vmem [thread:$0]  %s978_s1, 1024, %s38_s18, [#allocation6], %s820_s20, %s820_s20, %s821_s21  }
   0xf   :  { %s822_s24 = smov [#allocation2]  }
  0x10   :  { %s25_s25 = sshll.u32 %s822_s24, 4  ;;  %s26_s25 = int_to_ptr.vmem [resolvable:$true] %s25_s25 }
  0x11   :  { %s739_s26 = scalar_lea.vmem %s26_s25, 256  ;;  %p744_p6 = scmp.lt.s32.totalorder %s26_s25, %s26_s25 }
  0x12   :  { %p740_p5 = scmp.ne.s32.totalorder %s26_s25, %s739_s26  ;;  %p745_p7 = scmp.lt.s32.totalorder %s739_s26, %s739_s26 }
  0x14   :  { %p746_p8 = por %p745_p7, %p744_p6 }
  0x16   :  { %p747_p9 = pnand %p746_p8, %p740_p5 }
  0x18   :  { %750 = shalt.err (!%p747_p9)
}
  0x19   :  { %s823_s27 = smov 128   ;;  %s824_s28 = smov 8  }
  0x1a   :  { %31 = dma.hbm_to_vmem [thread:$0]  %s977_s0, 256, %s26_s25, [#allocation3], %s823_s27, %s823_s27, %s824_s28  }
  0x1b   :  { %s825_s1 = smov [#allocation7]   ;;  %s826_s13 = smov [#allocation8]  }
  0x1c   :  { %s51_s12 = sshll.u32 %s825_s1, 4  ;;  %s65_s14 = sshll.u32 %s826_s13, 4  ;;  %s52_s12 = int_to_ptr.vmem [resolvable:$true] %s51_s12  ;;  %s66_s14 = int_to_ptr.vmem [resolvable:$true] %s65_s14 }
  0x1d   :  { %s759_s15 = scalar_lea.vmem %s52_s12, 1024  ;;  %p764_p11 = scmp.lt.s32.totalorder %s52_s12, %s52_s12 }
  0x1e   :  { %p760_p10 = scmp.ne.s32.totalorder %s52_s12, %s759_s15  ;;  %p765_p12 = scmp.lt.s32.totalorder %s759_s15, %s759_s15 }
  0x20   :  { %p766_p13 = por %p765_p12, %p764_p11 }
  0x22   :  { %p767_p0 = pnand %p766_p13, %p760_p10 }
  0x24   :  { %770 = shalt.err (!%p767_p0)
}
  0x25   :  { %57 = dma.hbm_to_vmem [thread:$0]  %s980_s3, 1024, %s52_s12, [#allocation6], %s820_s20, %s820_s20, %s821_s21  }
  0x26   :  { %s779_s0 = scalar_lea.vmem %s66_s14, 1024  ;;  %p784_p2 = scmp.lt.s32.totalorder %s66_s14, %s66_s14 }
  0x27   :  { %p780_p1 = scmp.ne.s32.totalorder %s66_s14, %s779_s0  ;;  %p785_p3 = scmp.lt.s32.totalorder %s779_s0, %s779_s0 }
  0x29   :  { %p786_p4 = por %p785_p3, %p784_p2 }
  0x2b   :  { %p787_p5 = pnand %p786_p4, %p780_p1 }
  0x2d   :  { %790 = shalt.err (!%p787_p5)
}
  0x2e   :  { %71 = dma.hbm_to_vmem [thread:$0]  %s982_s5, 1024, %s66_s14, [#allocation9], %s820_s20, %s820_s20, %s821_s21  }
  0x2f   :  { %811 = dma.done.wait [#allocation3], 256  }
  0x30   :  { %812 = vsyncadd [#allocation3], 4294967040 }
  0x31   :  { %813 = dma.done.wait [#allocation6], 2048  }
  0x32   :  { %814 = vsyncadd [#allocation6], 4294965248 }
  0x33   :  { %815 = dma.done.wait [#allocation9], 1024  }
  0x34   :  { %816 = vsyncadd [#allocation9], 4294966272  ;;  %v827_v0 = vmov 0.0   ;;  %vm828_vm0 = vmmov 0   ;;  %v683_v1 = vld [vmem:[#allocation5 + $0x38] sm:$0xff]   ;;  %v684_v2 = vld [vmem:[#allocation5 + $0x30] sm:$0xff]   ;;  %v248_v46 = vlaneseq }
  0x35   :  { %612 = vmatprep.subr.bf16.mxu0 %v827_v0  ;;  %628 = vmatprep.mubr.msk.bf16.mxu0 %vm828_vm0, %v827_v0  ;;  %v685_v3 = vld [vmem:[#allocation5 + $0x28] sm:$0xff]   ;;  %v686_v4 = vld [vmem:[#allocation5 + $0x20] sm:$0xff]   ;;  %v687_v5 = vld [vmem:[#allocation5 + $0x18] sm:$0xff]  }
  0x36   :  { %632 = vmatprep.subr.bf16.mxu1 %v827_v0  ;;  %648 = vmatprep.mubr.msk.bf16.mxu1 %vm828_vm0, %v827_v0  ;;  %v688_v6 = vld [vmem:[#allocation5 + $0x10] sm:$0xff]   ;;  %v689_v7 = vld [vmem:[#allocation5 + $0x8] sm:$0xff]   ;;  %v690_v8 = vld [vmem:[#allocation5] sm:$0xff]   ;;  %v249_v47 = vshrl.u32 %v248_v46, 7 }
  0x37   :  { %613 = vmatpush3.bf16.msra.mxu0 %v683_v1  ;;  %v95_v9 = vld [vmem:[#allocation2] sm:$0xff]  ;;  %v96_v10 = vld [vmem:[#allocation2 + $0x8] sm:$0xff]  ;;  %v693_v14 = vld [vmem:[#allocation7 + $0x28] sm:$0xff]  }
  0x38   :  { %614 = vmatprep.subr.bf16.mxu0 %v827_v0  ;;  %v97_v11 = vpack.c.bf16 %v96_v10, %v95_v9  ;;  %v691_v12 = vld [vmem:[#allocation7 + $0x38] sm:$0xff]   ;;  %v692_v13 = vld [vmem:[#allocation7 + $0x30] sm:$0xff]   ;;  %v694_v15 = vld [vmem:[#allocation7 + $0x20] sm:$0xff]   ;;  %v943_v49 = vsub.s32 0, %v249_v47 }
  0x39   :  { %633 = vmatpush3.bf16.msra.mxu1 %v691_v12  ;;  %v695_v16 = vld [vmem:[#allocation7 + $0x18] sm:$0xff]   ;;  %v696_v17 = vld [vmem:[#allocation7 + $0x10] sm:$0xff]   ;;  %v697_v18 = vld [vmem:[#allocation7 + $0x8] sm:$0xff]  }
  0x3a   :  { %634 = vmatprep.subr.bf16.mxu1 %v827_v0  ;;  %v698_v19 = vld [vmem:[#allocation7] sm:$0xff]   ;;  %v558_v20 = vld [vmem:[%s979_s2] ss:$0 sm:$0xff]  ;;  %v699_v1 = vld [vmem:[#allocation8 + $0x38] sm:$0xff]  }
  0x3b   :  { %615 = vmatpush3.bf16.msra.mxu0 %v684_v2  ;;  %v240_v48 = vld [vmem:[%s984_s7] sm:$0x1] }
  0x3c   :  { %616 = vmatprep.subr.bf16.mxu0 %v827_v0  ;;  %v244_v53 = vld [vmem:[%s985_s8] sm:$0x1] }
  0x3d   :  { %635 = vmatpush3.bf16.msra.mxu1 %v692_v13  ;;  %v700_v2 = vld [vmem:[#allocation8 + $0x30] sm:$0xff]  }
  0x3e   :  { %636 = vmatprep.subr.bf16.mxu1 %v827_v0  ;;  %v567_v9 = vld [vmem:[%s981_s4] ss:$0 sm:$0xff] }
  0x3f   :  { %617 = vmatpush3.bf16.msra.mxu0 %v685_v3  ;;  %v701_v3 = vld [vmem:[#allocation8 + $0x28] sm:$0xff]  }
  0x40   :  { %618 = vmatprep.subr.bf16.mxu0 %v827_v0 }
  0x41   :  { %637 = vmatpush3.bf16.msra.mxu1 %v693_v14 }
  0x42   :  { %638 = vmatprep.subr.bf16.mxu1 %v827_v0 }
  0x43   :  { %619 = vmatpush3.bf16.msra.mxu0 %v686_v4  ;;  %v702_v4 = vld [vmem:[#allocation8 + $0x20] sm:$0xff]  }
  0x44   :  { %620 = vmatprep.subr.bf16.mxu0 %v827_v0 }
  0x45   :  { %639 = vmatpush3.bf16.msra.mxu1 %v694_v15 }
  0x46   :  { %640 = vmatprep.subr.bf16.mxu1 %v827_v0 }
  0x47   :  { %621 = vmatpush3.bf16.msra.mxu0 %v687_v5  ;;  %v703_v5 = vld [vmem:[#allocation8 + $0x18] sm:$0xff]  }
  0x48   :  { %622 = vmatprep.subr.bf16.mxu0 %v827_v0 }
  0x49   :  { %641 = vmatpush3.bf16.msra.mxu1 %v695_v16 }
  0x4a   :  { %642 = vmatprep.subr.bf16.mxu1 %v827_v0 }
  0x4b   :  { %623 = vmatpush3.bf16.msra.mxu0 %v688_v6  ;;  %v704_v6 = vld [vmem:[#allocation8 + $0x10] sm:$0xff]  }
  0x4c   :  { %624 = vmatprep.subr.bf16.mxu0 %v827_v0 }
  0x4d   :  { %643 = vmatpush3.bf16.msra.mxu1 %v696_v17 }
  0x4e   :  { %644 = vmatprep.subr.bf16.mxu1 %v827_v0 }
  0x4f   :  { %625 = vmatpush3.bf16.msra.mxu0 %v689_v7  ;;  %v705_v7 = vld [vmem:[#allocation8 + $0x8] sm:$0xff]  }
  0x50   :  { %626 = vmatprep.subr.bf16.mxu0 %v827_v0 }
  0x51   :  { %645 = vmatpush3.bf16.msra.mxu1 %v697_v18 }
  0x52   :  { %646 = vmatprep.subr.bf16.mxu1 %v827_v0 }
  0x53   :  { %627 = vmatpush3.bf16.msra.mxu0 %v690_v8  ;;  %v706_v8 = vld [vmem:[#allocation8] sm:$0xff]  }
  0x54   :  { %652 = vmatprep.subr.bf16.mxu0 %v827_v0 }
  0x55   :  { %647 = vmatpush3.bf16.msra.mxu1 %v698_v19 }
  0x56   :  { %629 = vmatmul.mubr.bf16.vlgmr.msra.gmra.mxu0 %v97_v11 }
  0x57   :  { %668 = vmatprep.mubr.msk.bf16.mxu0 %vm828_vm0, %v827_v0  ;;  %653 = vmatpush3.bf16.msra.mxu0 %v699_v1 }
  0x58   :  { %654 = vmatprep.subr.bf16.mxu0 %v827_v0 }
  0x5b   :  { %655 = vmatpush3.bf16.msra.mxu0 %v700_v2 }
  0x5c   :  { %656 = vmatprep.subr.bf16.mxu0 %v827_v0 }
  0x5f   :  { %657 = vmatpush3.bf16.msra.mxu0 %v701_v3 }
  0x60   :  { %658 = vmatprep.subr.bf16.mxu0 %v827_v0 }
  0x63   :  { %659 = vmatpush3.bf16.msra.mxu0 %v702_v4 }
  0x64   :  { %660 = vmatprep.subr.bf16.mxu0 %v827_v0 }
  0x67   :  { %661 = vmatpush3.bf16.msra.mxu0 %v703_v5 }
  0x68   :  { %662 = vmatprep.subr.bf16.mxu0 %v827_v0 }
  0x6b   :  { %663 = vmatpush3.bf16.msra.mxu0 %v704_v6 }
  0x6c   :  { %664 = vmatprep.subr.bf16.mxu0 %v827_v0 }
  0x6f   :  { %665 = vmatpush3.bf16.msra.mxu0 %v705_v7 }
  0x70   :  { %666 = vmatprep.subr.bf16.mxu0 %v827_v0 }
  0x73   :  { %667 = vmatpush3.bf16.msra.mxu0 %v706_v8 }
 0x116   :  { %v203_v21 = vpop.f32.mrf.mxu0 }
 0x117   :  { %v204_v22 = vadd.f32 %v558_v20, %v203_v21 }
 0x118   :  { %v630_v23 = vpop.f32.mrf.mxu0 }
 0x119   :  { %v210_v24 = vmax.f32 %v204_v22, 0.0 }
 0x11a   :  { %v206_v25 = vpop.f32.mrf.mxu0 }
 0x11b   :  { %v220_v26 = vrot.slane %v210_v24, 4  ;;  %v227_v27 = vmul.f32 %v210_v24, %v210_v24  ;;  %v207_v51 = vadd.f32 %v558_v20, %v206_v25 }
 0x11c   :  { %v631_v28 = vpop.f32.mrf.mxu0 }
 0x11d   :  { %v221_v29 = vadd.f32 %v220_v26, %v210_v24  ;;  %v230_v30 = vrot.slane %v227_v27, 4  ;;  %v211_v56 = vmax.f32 %v207_v51, 0.0 }
 0x11f   :  { %v222_v31 = vrot.slane %v221_v29, 2  ;;  %v231_v32 = vadd.f32 %v230_v30, %v227_v27 }
 0x121   :  { %v223_v33 = vadd.f32 %v222_v31, %v221_v29  ;;  %v232_v34 = vrot.slane %v231_v32, 2 }
 0x123   :  { %v224_v35 = vrot.slane %v223_v33, 1  ;;  %v233_v36 = vadd.f32 %v232_v34, %v231_v32  ;;  %v401_v34 = vld [vmem:[%s986_s9] sm:$0x1] }
 0x125   :  { %v234_v37 = vrot.slane %v233_v36, 1  ;;  %v225_v38 = vadd.f32 %v224_v35, %v223_v33 }
 0x127   :  { %v235_v39 = vadd.f32 %v234_v37, %v233_v36  ;;  %v226_v40 = vmul.f32 0.125, %v225_v38  ;;  %v405_v38 = vld [vmem:[%s987_s10] sm:$0x1]  ;;  %s829_s10 = smov [#allocation10]  }
 0x128   :  { %s544_s29 = sshll.u32 %s829_s10, 4  ;;  %s545_s29 = int_to_ptr.vmem [resolvable:$true] %s544_s29 }
 0x129   :  { %v236_v41 = vmul.f32 0.125, %v235_v39  ;;  %v237_v42 = vmul.f32 %v226_v40, %v226_v40  ;;  %s791_s30 = scalar_lea.vmem %s545_s29, 256  ;;  %p796_p7 = scmp.lt.s32.totalorder %s545_s29, %s545_s29 }
 0x12a   :  { %p792_p6 = scmp.ne.s32.totalorder %s545_s29, %s791_s30  ;;  %p797_p8 = scmp.lt.s32.totalorder %s791_s30, %s791_s30 }
 0x12b   :  { %v238_v43 = vsub.f32 %v236_v41, %v237_v42 }
 0x12c   :  { %p798_p9 = por %p797_p8, %p796_p7 }
 0x12d   :  { %v239_v44 = vmax.f32 %v238_v43, 0.0 }
 0x12e   :  { %p799_p10 = pnand %p798_p9, %p792_p6 }
 0x12f   :  { %v241_v45 = vadd.f32 1e-05, %v239_v44 }
 0x131   :  { %707 = vrsqrt.f32 %v241_v45 }
 0x13e   :  { %v708_v50 = vpop.eup %707 }
 0x13f   :  { %v243_v52 = vmul.f32 %v708_v50, %v240_v48  ;;  %v576_v50 = vld [vmem:[%s983_s6] ss:$0 sm:$0xff] }
 0x141   :  { %v245_v54 = vmul.f32 %v243_v52, %v226_v40  ;;  %v251_v55 = vrot.slane %v243_v52, %v943_v49 }
 0x143   :  { %v246_v57 = vsub.f32 %v244_v53, %v245_v54  ;;  %v253_v58 = vmul.f32 %v251_v55, %v210_v24  ;;  %v254_v59 = vmul.f32 %v251_v55, %v211_v56 }
 0x145   :  { %v259_v60 = vrot.slane %v246_v57, %v943_v49 }
 0x147   :  { %v262_v61 = vadd.f32 %v259_v60, %v254_v59  ;;  %v261_v62 = vadd.f32 %v259_v60, %v253_v58 }
 0x149   :  { %v263_v63 = vpack.c.bf16 %v262_v61, %v261_v62 }
 0x14b   :  { %649 = vmatmul.mubr.bf16.vlgmr.msra.gmra.mxu1 %v263_v63 }
 0x20b   :  { %v369_v10 = vpop.f32.mrf.mxu1 }
 0x20c   :  { %v370_v11 = vadd.f32 %v567_v9, %v369_v10 }
 0x20d   :  { %v650_v12 = vpop.f32.mrf.mxu1 }
 0x20e   :  { %v376_v13 = vmax.f32 %v370_v11, 0.0 }
 0x20f   :  { %v372_v14 = vpop.f32.mrf.mxu1 }
 0x210   :  { %v381_v15 = vrot.slane %v376_v13, 4  ;;  %v388_v16 = vmul.f32 %v376_v13, %v376_v13  ;;  %v373_v36 = vadd.f32 %v567_v9, %v372_v14 }
 0x211   :  { %v651_v17 = vpop.f32.mrf.mxu1 }
 0x212   :  { %v382_v18 = vadd.f32 %v381_v15, %v376_v13  ;;  %v391_v19 = vrot.slane %v388_v16, 4  ;;  %v377_v41 = vmax.f32 %v373_v36, 0.0 }
 0x214   :  { %v383_v20 = vrot.slane %v382_v18, 2  ;;  %v392_v21 = vadd.f32 %v391_v19, %v388_v16 }
 0x216   :  { %v384_v22 = vadd.f32 %v383_v20, %v382_v18  ;;  %v393_v0 = vrot.slane %v392_v21, 2 }
 0x218   :  { %v385_v23 = vrot.slane %v384_v22, 1  ;;  %v394_v24 = vadd.f32 %v393_v0, %v392_v21 }
 0x21a   :  { %v395_v25 = vrot.slane %v394_v24, 1  ;;  %v386_v26 = vadd.f32 %v385_v23, %v384_v22 }
 0x21c   :  { %v396_v27 = vadd.f32 %v395_v25, %v394_v24  ;;  %v387_v28 = vmul.f32 0.125, %v386_v26 }
 0x21e   :  { %v397_v29 = vmul.f32 0.125, %v396_v27  ;;  %v398_v30 = vmul.f32 %v387_v28, %v387_v28 }
 0x220   :  { %v399_v31 = vsub.f32 %v397_v29, %v398_v30 }
 0x222   :  { %v400_v32 = vmax.f32 %v399_v31, 0.0 }
 0x224   :  { %v402_v33 = vadd.f32 1e-05, %v400_v32 }
 0x226   :  { %709 = vrsqrt.f32 %v402_v33 }
 0x233   :  { %v710_v35 = vpop.eup %709 }
 0x234   :  { %v404_v37 = vmul.f32 %v710_v35, %v401_v34 }
 0x236   :  { %v406_v39 = vmul.f32 %v404_v37, %v387_v28  ;;  %v412_v40 = vrot.slane %v404_v37, %v943_v49 }
 0x238   :  { %v407_v42 = vsub.f32 %v405_v38, %v406_v39  ;;  %v414_v43 = vmul.f32 %v412_v40, %v376_v13  ;;  %v415_v44 = vmul.f32 %v412_v40, %v377_v41 }
 0x23a   :  { %v420_v45 = vrot.slane %v407_v42, %v943_v49 }
 0x23c   :  { %v422_v46 = vadd.f32 %v420_v45, %v414_v43  ;;  %v423_v47 = vadd.f32 %v420_v45, %v415_v44 }
 0x23e   :  { %v424_v48 = vpack.c.bf16 %v423_v47, %v422_v46 }
 0x240   :  { %669 = vmatmul.mubr.bf16.vlgmr.msra.gmra.mxu0 %v424_v48 }
 0x300   :  { %v530_v51 = vpop.f32.mrf.mxu0 }
 0x301   :  { %v531_v52 = vadd.f32 %v576_v50, %v530_v51 }
 0x302   :  { %v670_v53 = vpop.f32.mrf.mxu0 }
 0x303   :  { %537 = vst [vmem:[#allocation10] sm:$0xff] %v531_v52 }
 0x304   :  { %v533_v54 = vpop.f32.mrf.mxu0 }
 0x305   :  { %v534_v55 = vadd.f32 %v576_v50, %v533_v54 }
 0x306   :  { %v671_v56 = vpop.f32.mrf.mxu0 }
 0x307   :  { %538 = vst [vmem:[#allocation10 + $0x8] sm:$0xff] %v534_v55 }
 0x308   :  { %802 = shalt.err (!%p799_p10)
}
 0x309   :  { %550 = dma.vmem_to_hbm [thread:$0]  %s545_s29, 256, %s988_s11, [#allocation4], %s823_s27, %s823_s27, %s824_s28  }
 0x30a   :  { %817 = dma.done.wait [#allocation4], 256  }
 0x30b   :  { %818 = vsyncadd [#allocation4], 4294967040 }
 0x30c   :  { %554 = vsyncpa [#allocation3], 1 }
 0x30d   :  { %555 = vsyncpa [#allocation6], 1 }
 0x30e   :  { %556 = vsyncpa [#allocation9], 1 }
 0x30f   :  { %557 = vsyncpa [#allocation4], 1 }

</bundles_post_ra>
